<compile_context>
chip_gen: v7x
topology: tpu7x:2x2x1
jax: 0.10.0
libtpu: 0.0.40
codegen_flags: <defaults>
</compile_context>

<pallas_src>
import jax
import jax.numpy as jnp
from jax.experimental import pallas as pl
from jax.experimental.pallas import tpu as pltpu


def _awl_kernel(losses_ref, params_ref, out_ref):
    # losses_ref, params_ref: (1, num) f32 in VMEM (full-array blocks).
    # out_ref: (1, 1) f32 in SMEM.
    losses = losses_ref[0, :]
    params = params_ref[0, :]
    # VPU elementwise + EUP exp + XLU cross-lane reduce on the logical extent;
    # the (1,1) result goes out via a scalar SMEM store (no padded vector store).
    out_ref[0, 0] = jnp.sum(0.5 * jnp.exp(-params) * losses + params)


def automatic_weighted_loss(losses, params):
    """losses: (num,) per-task scalar losses; params: (num,) weighting params.

    Both are expected to be device-resident and produced inside the same jit
    region for best performance. Returns a f32 scalar.
    """
    losses2d = jnp.asarray(losses, jnp.float32).reshape(1, -1)   # metadata-only
    params2d = jnp.asarray(params, jnp.float32).reshape(1, -1)   # metadata-only
    num = losses2d.shape[1]

    out = pl.pallas_call(
        _awl_kernel,
        out_shape=jax.ShapeDtypeStruct((1, 1), jnp.float32),
        # No grid: single invocation, whole arrays as the blocks (2 tiny DMAs).
        in_specs=[
            pl.BlockSpec((1, num), lambda: (0, 0)),
            pl.BlockSpec((1, num), lambda: (0, 0)),
        ],
        # Scalar result through SMEM: no padded (8,128) output tile.
        out_specs=pl.BlockSpec(memory_space=pltpu.MemorySpace.SMEM),
        cost_estimate=pl.CostEstimate(
            flops=4 * num,               # mul, mul, add + reduce per task
            transcendentals=num,         # one exp per task
            bytes_accessed=8 * num + 4,  # two (1,num) f32 in, one f32 out
        ),
    )(losses2d, params2d)
    return out[0, 0]


class AutomaticWeightedLossJAX:
    """Mirror of the PyTorch module. Parameters initialized to ones(num).

    Preferred call: a single (num,) device-resident loss vector produced inside
    the surrounding jit. Multiple Python/scalar losses are also accepted (they
    are stacked once, which is what the original *x signature implies).
    """

    def __init__(self, num=2):
        self.num = num
        self.params = jnp.ones((num,), dtype=jnp.float32)  # torch.ones(num)
        # TODO(synk): autograd/learnability of params is handled by the outer
        # JAX training loop (params are a plain array here, not a Parameter).

    def __call__(self, *losses):
        if len(losses) == 1 and jnp.ndim(losses[0]) == 1:
            loss_vec = jnp.asarray(losses[0], jnp.float32)      # fast path
        else:
            loss_vec = jnp.stack(
                [jnp.asarray(l, dtype=jnp.float32).reshape(()) for l in losses]
            )
        return automatic_weighted_loss(loss_vec, self.params)


if __name__ == "__main__":
    key = jax.random.PRNGKey(0)
    k1, k2 = jax.random.split(key)

    # Two synthetic per-task scalar losses (as in the module's example usage).
    loss1 = jnp.abs(jax.random.normal(k1, ())) + 1.0
    loss2 = jnp.abs(jax.random.normal(k2, ())) + 2.0
    loss_vec = jnp.stack([loss1, loss2])

    awl = AutomaticWeightedLossJAX(num=2)

    # jit the whole thing so the (free) reshapes + pallas_call sit in one region.
    fwd = jax.jit(automatic_weighted_loss)
    out = jax.block_until_ready(fwd(loss_vec, awl.params))
    ref = jnp.sum(0.5 * jnp.exp(-awl.params) * loss_vec + awl.params)
    assert jnp.allclose(out, ref, rtol=1e-5, atol=1e-5), (out, ref)

    # Class fast path (vector in, no per-scalar stacking).
    out_cls = jax.block_until_ready(jax.jit(lambda v: awl(v))(loss_vec))
    assert jnp.allclose(out_cls, ref, rtol=1e-5, atol=1e-5), (out_cls, ref)

    # Padded-lane safety check: non-trivial, non-lane-aligned num vs jnp ref.
    k3, k4 = jax.random.split(k2)
    num5 = 5
    losses5 = jax.random.normal(k3, (num5,)) ** 2 + 0.5
    params5 = jax.random.normal(k4, (num5,)) * 0.3 + 1.0
    out5 = jax.block_until_ready(fwd(losses5, params5))
    ref5 = jnp.sum(0.5 * jnp.exp(-params5) * losses5 + params5)
    assert jnp.allclose(out5, ref5, rtol=1e-5, atol=1e-5), (out5, ref5)

    print("KERNEL_OK")
</pallas_src>

<mosaic_0001>
module attributes {stable_mosaic.version = 11 : i64} {
  func.func @_awl_kernel(%arg0: memref<1x2xf32, #tpu.memory_space<vmem>>, %arg1: memref<1x2xf32, #tpu.memory_space<vmem>>, %arg2: memref<1x1xf32, #tpu.memory_space<smem>>) attributes {dimension_semantics = [], scalar_prefetch = 0 : i64, scratch_operands = 0 : i64, tpu.core_type = #tpu.core_type<tc>} {
    %c0 = arith.constant 0 : index
    %c0_0 = arith.constant 0 : index
    %0 = vector.load %arg0[%c0, %c0_0] : memref<1x2xf32, #tpu.memory_space<vmem>>, vector<1x2xf32>
    %1 = vector.shape_cast %0 : vector<1x2xf32> to vector<2xf32>
    %c0_1 = arith.constant 0 : index
    %c0_2 = arith.constant 0 : index
    %2 = vector.load %arg1[%c0_1, %c0_2] : memref<1x2xf32, #tpu.memory_space<vmem>>, vector<1x2xf32>
    %3 = vector.shape_cast %2 : vector<1x2xf32> to vector<2xf32>
    %cst = arith.constant 0.000000e+00 : f32
    %4 = vector.broadcast %cst : f32 to vector<2xf32>
    %5 = arith.subf %4, %3 : vector<2xf32>
    %6 = math.exp %5 : vector<2xf32>
    %cst_3 = arith.constant 5.000000e-01 : f32
    %7 = vector.broadcast %cst_3 : f32 to vector<2xf32>
    %8 = arith.mulf %7, %6 : vector<2xf32>
    %9 = arith.mulf %8, %1 : vector<2xf32>
    %10 = arith.addf %9, %3 : vector<2xf32>
    %11 = vector.shape_cast %10 : vector<2xf32> to vector<1x2xf32>
    %cst_4 = arith.constant dense<0.000000e+00> : vector<1xf32>
    %12 = vector.multi_reduction <add>, %11, %cst_4 [1] : vector<1x2xf32> to vector<1xf32>
    %13 = vector.shape_cast %12 : vector<1xf32> to vector<1x1xf32>
    %14 = vector.extract %13[0, 0] : f32 from vector<1x1xf32>
    %c0_5 = arith.constant 0 : index
    %c0_6 = arith.constant 0 : index
    %15 = memref.load %arg2[%c0_5, %c0_6] : memref<1x1xf32, #tpu.memory_space<smem>>
    memref.store %14, %arg2[%c0_5, %c0_6] : memref<1x1xf32, #tpu.memory_space<smem>>
    return
  }
}

</mosaic_0001>

<bundles_post_ra>
// kernel: automatic_weighted_loss.1
= control target key start
LH: loop header
LB: loop body
LE: loop exit
PB: predicated region body
PF: predicated region fallthrough
CT: control target
= control target key end

     0   :  { %s91_s0 = inlined_call_operand.vmem [shape: f32[1,2], index: 0, kind: input, shape index: {}]   ;;  %s92_s1 = inlined_call_operand.vmem [shape: f32[1,2], index: 1, kind: input, shape index: {}]   ;;  %s93_s2 = inlined_call_operand.hbm [shape: f32[1,1], index: 2, kind: output, shape index: {}]  }
   0x1   :  { %v13_v0 = vld [vmem:[%s92_s1] sm:$0x1] }
   0x2   :  { %v14_v1 = vsub.f32 0.0, %v13_v0 }
   0x3   :  { %7 = vsyncpa [#allocation3], 0  ;;  %v12_v4 = vld [vmem:[%s91_s0] sm:$0x1]  ;;  %vm20_vm0 = vcmask 8192   ;;  %s45_s15 = scalar_lea.hbm %s93_s2, 16 }
   0x4   :  { %v15_v2 = vmul.f32 1.442695, %v14_v1  ;;  %p46_p0 = scmp.ne.s32.totalorder %s93_s2, %s45_s15  ;;  %p49_p1 = scmp.lt.u32.totalorder %s45_s15, %s93_s2 }
   0x6   :  { %43 = vpow2.f32 %v15_v2  ;;  %p51_p2 = pnand %p49_p1, %p46_p0 }
  0x10   :  { %v44_v3 = vpop.eup %43 }
  0x11   :  { %v17_v5 = vmul.f32 0.5, %v44_v3 }
  0x13   :  { %v18_v6 = vmul.f32 %v17_v5, %v12_v4 }
  0x15   :  { %v19_v7 = vadd.f32 %v18_v6, %v13_v0 }
  0x17   :  { %v21_v8 = vsel %vm20_vm0, %v19_v7, 0.0 }
  0x18   :  { %22 = vadd.xlane.f32.xlu0 %v21_v8 }
  0xa5   :  { %v23_v9 = vpop.xlane.xlu0 %22 }
  0xa6   :  { %40 = vpush %v23_v9 }
  0xd7   :  { %s41_s13 = spop %40 }
  0xd8   :  { %26 = sst [smem:[#allocation2]] %s41_s13 }
  0xd9   :  { %54 = shalt.err (!%p51_p2)
}
  0xda   :  { %s57_s19 = smov [#allocation2]  }
  0xdb   :  { %34 = dma.smem_to_hbm %s57_s19, 16, %s93_s2, [#allocation3]  }
  0xdc   :  { %55 = dma.done.wait [#allocation3], 16  }
  0xdd   :  { %56 = vsyncadd [#allocation3], 4294967280 }
  0xde   :  { %38 = sfence }
  0xdf   :  { %39 = vsyncpa [#allocation3], 1 }

</bundles_post_ra>
